<compile_context>
chip_gen: v7x
topology: tpu7x:2x2x1
jax: 0.10.0
libtpu: 0.0.40
codegen_flags: <defaults>
</compile_context>

<pallas_src>
import jax
import jax.numpy as jnp
from jax.experimental import pallas as pl
from jax.experimental.pallas import tpu as pltpu


def _linear_interleaved_kernel(w_ref, b_ref, x_ref, o_ref):
    """Fused Linear(2, 2) on a [R, 128] slab, features interleaved on lanes.

    Lane 2i holds x[s, 0] and lane 2i+1 holds x[s, 1] for sample s = 64*row + i.
    The result is stored in the same interleaved layout:
      even lanes: y0 = x0*W00 + x1*W01 + b0
      odd  lanes: y1 = x0*W10 + x1*W11 + b1

    w_ref: SMEM [4]  (row-major flat PyTorch weight: W00, W01, W10, W11)
    b_ref: SMEM [2]
    x_ref: VMEM [R, 128]  (R multiple of 8 -> full (8,128) vregs)
    o_ref: VMEM [R, 128]
    """
    x = x_ref[...]                                            # [R, 128] f32

    lane = jax.lax.broadcasted_iota(jnp.int32, (1, x.shape[1]), 1)
    even = (lane & 1) == 0                                    # [1, 128] bool

    w00, w01, w10, w11 = w_ref[0], w_ref[1], w_ref[2], w_ref[3]
    b0, b1 = b_ref[0], b_ref[1]

    # Per-lane coefficients, built once on a single sublane and broadcast in
    # the FMAs below (no per-row re-selection).
    c_self = jnp.where(even, w00, w11)                        # coeff of own feature
    c_partner = jnp.where(even, w01, w10)                     # coeff of partner feature
    c_bias = jnp.where(even, b0, b1)

    # Partner feature sits in the adjacent lane: even lanes need lane+1,
    # odd lanes need lane-1.  Lane rotations run on the XLU.
    fwd = pltpu.roll(x, shift=127, axis=1)                    # lane L <- x[L+1]
    bwd = pltpu.roll(x, shift=1, axis=1)                      # lane L <- x[L-1]
    partner = jnp.where(even, fwd, bwd)

    o_ref[...] = (x * c_self + partner * c_partner + c_bias).astype(o_ref.dtype)


def _round_up(n, m):
    return ((n + m - 1) // m) * m


def embedding_net_forward(x, weight, bias, *, max_block_rows=4096):
    """Pallas forward for EmbeddingNet: y = x @ W^T + b.

    x:      [B, 2]  float32
    weight: [2, 2]  float32 (PyTorch [out_features, in_features] convention)
    bias:   [2]     float32
    returns [B, 2]  float32
    """
    B, f_in = x.shape
    f_out, f_in_w = weight.shape
    assert f_in == 2 and f_in_w == 2 and f_out == 2 and bias.shape == (f_out,), (
        "kernel is specialized to Linear(2, 2) (lane-interleaved feature pairs)")

    LANE = 128
    SUB = 8
    samples_per_row = LANE // f_in                            # 64 samples / row

    rows_needed = max(1, pl.cdiv(B, samples_per_row))
    # Cap per-block footprint (~2 MiB of x at 4096 rows) and split into >= 2
    # grid steps whenever there is enough work so megacore (v7x) can shard it.
    num_blocks = max(1, pl.cdiv(rows_needed, max_block_rows))
    if rows_needed >= 2 * SUB:
        num_blocks = max(num_blocks, 2)
    block_rows = _round_up(pl.cdiv(rows_needed, num_blocks), SUB)
    n_rows = num_blocks * block_rows
    grid = (num_blocks,)

    # Native row-major flatten keeps features interleaved on even/odd lanes;
    # only the tail is zero-padded (padded lanes produce bias values that are
    # sliced off below).  No transposes anywhere.
    flat = x.reshape(-1)
    pad = n_rows * LANE - flat.shape[0]
    if pad:
        flat = jnp.pad(flat, (0, pad))
    x2d = flat.reshape(n_rows, LANE)

    out2d = pl.pallas_call(
        _linear_interleaved_kernel,
        out_shape=jax.ShapeDtypeStruct((n_rows, LANE), x.dtype),
        grid=grid,
        in_specs=[
            pl.BlockSpec(memory_space=pltpu.MemorySpace.SMEM),   # weight (flat 4)
            pl.BlockSpec(memory_space=pltpu.MemorySpace.SMEM),   # bias (2)
            pl.BlockSpec((block_rows, LANE), lambda i: (i, 0)),  # x slab
        ],
        out_specs=pl.BlockSpec((block_rows, LANE), lambda i: (i, 0)),
        compiler_params=pltpu.CompilerParams(
            dimension_semantics=("parallel",),        # shards grid across TCs (v7x)
            vmem_limit_bytes=48 * 1024 * 1024,        # safe on v5e/v6e and v7x (64 MiB)
        ),
    )(weight.reshape(-1), bias, x2d)

    # Same free row-major view back to [B, 2].
    return out2d.reshape(n_rows * samples_per_row, f_out)[:B, :]


def reference_forward(x, weight, bias):
    return x @ weight.T + bias[None, :]


if __name__ == "__main__":
    key = jax.random.PRNGKey(0)
    kx1, kx2, kw, kb = jax.random.split(key, 4)

    in_features, out_features = 2, 2
    bound = 1.0 / jnp.sqrt(jnp.float32(in_features))
    weight = jax.random.uniform(kw, (out_features, in_features),
                                minval=-bound, maxval=bound, dtype=jnp.float32)
    bias = jax.random.uniform(kb, (out_features,),
                              minval=-bound, maxval=bound, dtype=jnp.float32)

    fwd = jax.jit(embedding_net_forward)

    # Production-like tiny batch plus a larger batch that exercises the
    # interleaved multi-row layout and the zero-padding path.
    for B, kk in ((8, kx1), (200, kx2)):
        x = jax.random.normal(kk, (B, in_features), dtype=jnp.float32)
        out = jax.block_until_ready(fwd(x, weight, bias))
        ref = reference_forward(x, weight, bias)
        assert out.shape == (B, out_features)
        assert jnp.allclose(out, ref, atol=1e-5, rtol=1e-5)

    print("KERNEL_OK")
</pallas_src>

<mosaic_0001>
module attributes {stable_mosaic.version = 11 : i64} {
  func.func @_linear_interleaved_kernel(%arg0: i32, %arg1: memref<4xf32, #tpu.memory_space<smem>>, %arg2: memref<2xf32, #tpu.memory_space<smem>>, %arg3: memref<8x128xf32, #tpu.memory_space<vmem>>, %arg4: memref<8x128xf32, #tpu.memory_space<vmem>>) attributes {dimension_semantics = [#tpu.dimension_semantics<parallel>], iteration_bounds = array<i64: 1>, scalar_prefetch = 0 : i64, scratch_operands = 0 : i64, tpu.core_type = #tpu.core_type<tc>, window_params = [{transform_indices = @transform_0, window_bounds = array<i64: 4>}, {transform_indices = @transform_1, window_bounds = array<i64: 2>}, {transform_indices = @transform_2, window_bounds = array<i64: 8, 128>}, {transform_indices = @transform_3, window_bounds = array<i64: 8, 128>}]} {
    %c0 = arith.constant 0 : index
    %c0_0 = arith.constant 0 : index
    %0 = vector.load %arg3[%c0, %c0_0] : memref<8x128xf32, #tpu.memory_space<vmem>>, vector<8x128xf32>
    %1 = tpu.iota {dimensions = array<i32: 1>} : vector<1x128xi32>
    %c1_i32 = arith.constant 1 : i32
    %2 = vector.broadcast %c1_i32 : i32 to vector<1x128xi32>
    %3 = arith.andi %1, %2 : vector<1x128xi32>
    %c0_i32 = arith.constant 0 : i32
    %4 = vector.broadcast %c0_i32 : i32 to vector<1x128xi32>
    %5 = arith.cmpi eq, %3, %4 : vector<1x128xi32>
    %c0_1 = arith.constant 0 : index
    %6 = memref.load %arg1[%c0_1] : memref<4xf32, #tpu.memory_space<smem>>
    %c1 = arith.constant 1 : index
    %7 = memref.load %arg1[%c1] : memref<4xf32, #tpu.memory_space<smem>>
    %c2 = arith.constant 2 : index
    %8 = memref.load %arg1[%c2] : memref<4xf32, #tpu.memory_space<smem>>
    %c3 = arith.constant 3 : index
    %9 = memref.load %arg1[%c3] : memref<4xf32, #tpu.memory_space<smem>>
    %c0_2 = arith.constant 0 : index
    %10 = memref.load %arg2[%c0_2] : memref<2xf32, #tpu.memory_space<smem>>
    %c1_3 = arith.constant 1 : index
    %11 = memref.load %arg2[%c1_3] : memref<2xf32, #tpu.memory_space<smem>>
    %12 = vector.broadcast %6 : f32 to vector<1x128xf32>
    %13 = vector.broadcast %9 : f32 to vector<1x128xf32>
    %14 = arith.select %5, %12, %13 : vector<1x128xi1>, vector<1x128xf32>
    %15 = vector.broadcast %7 : f32 to vector<1x128xf32>
    %16 = vector.broadcast %8 : f32 to vector<1x128xf32>
    %17 = arith.select %5, %15, %16 : vector<1x128xi1>, vector<1x128xf32>
    %18 = vector.broadcast %10 : f32 to vector<1x128xf32>
    %19 = vector.broadcast %11 : f32 to vector<1x128xf32>
    %20 = arith.select %5, %18, %19 : vector<1x128xi1>, vector<1x128xf32>
    %c127_i32 = arith.constant 127 : i32
    %21 = tpu.dynamic_rotate %0 by %c127_i32 dim 1 : vector<8x128xf32>, i32 -> vector<8x128xf32>
    %c1_i32_4 = arith.constant 1 : i32
    %22 = tpu.dynamic_rotate %0 by %c1_i32_4 dim 1 : vector<8x128xf32>, i32 -> vector<8x128xf32>
    %23 = vector.shape_cast %5 : vector<1x128xi1> to vector<1x128xi1>
    %24 = vector.broadcast %23 : vector<1x128xi1> to vector<8x128xi1>
    %25 = arith.select %24, %21, %22 : vector<8x128xi1>, vector<8x128xf32>
    %26 = vector.broadcast %14 : vector<1x128xf32> to vector<8x128xf32>
    %27 = arith.mulf %0, %26 : vector<8x128xf32>
    %28 = vector.broadcast %17 : vector<1x128xf32> to vector<8x128xf32>
    %29 = arith.mulf %25, %28 : vector<8x128xf32>
    %30 = arith.addf %27, %29 : vector<8x128xf32>
    %31 = vector.broadcast %20 : vector<1x128xf32> to vector<8x128xf32>
    %32 = arith.addf %30, %31 : vector<8x128xf32>
    %c0_5 = arith.constant 0 : index
    %c0_6 = arith.constant 0 : index
    %33 = vector.load %arg4[%c0_5, %c0_6] : memref<8x128xf32, #tpu.memory_space<vmem>>, vector<8x128xf32>
    tpu.vector_store %arg4[%c0_5, %c0_6], %32 {strides = array<i32>} : memref<8x128xf32, #tpu.memory_space<vmem>>, vector<8x128xf32>,
    return
  }
  func.func @transform_0(%arg0: i32) -> i32 {
    %c0_i32 = arith.constant 0 : i32
    %c0_i32_0 = arith.constant 0 : i32
    return %c0_i32 : i32
  }
  func.func @transform_1(%arg0: i32) -> i32 {
    %c0_i32 = arith.constant 0 : i32
    %c0_i32_0 = arith.constant 0 : i32
    return %c0_i32 : i32
  }
  func.func @transform_2(%arg0: i32) -> (i32, i32) {
    %c0_i32 = arith.constant 0 : i32
    %c0_i32_0 = arith.constant 0 : i32
    return %arg0, %c0_i32 : i32, i32
  }
  func.func @transform_3(%arg0: i32) -> (i32, i32) {
    %c0_i32 = arith.constant 0 : i32
    %c0_i32_0 = arith.constant 0 : i32
    return %arg0, %c0_i32 : i32, i32
  }
}

</mosaic_0001>

<bundles_post_ra>
// kernel: embedding_net_forward.1
= control target key start
LH: loop header
LB: loop body
LE: loop exit
PB: predicated region body
PF: predicated region fallthrough
CT: control target
= control target key end

     0   :  { %8 = vsyncpa [#allocation3], 0  ;;  %s149_s0 = inlined_call_operand.vmem [shape: f32[4], index: 0, kind: input, shape index: {}]   ;;  %s150_s1 = inlined_call_operand.vmem [shape: f32[2], index: 1, kind: input, shape index: {}]   ;;  %s151_s2 = inlined_call_operand.vmem [shape: f32[8,128], index: 2, kind: input, shape index: {}]   ;;  %s152_s3 = inlined_call_operand.vmem [shape: f32[8,128], index: 3, kind: output, shape index: {}]  }
   0x1   :  { %s16_s14 = sshll.u32 %s149_s0, 4  ;;  %s17_s14 = int_to_ptr.vmem [resolvable:$true] %s16_s14 }
   0x2   :  { %9 = vsyncpa [#allocation5], 0  ;;  %s26_s17 = sshll.u32 %s150_s1, 4  ;;  %s85_s18 = scalar_lea.vmem %s17_s14, 16  ;;  %s27_s17 = int_to_ptr.vmem [resolvable:$true] %s26_s17 }
   0x3   :  { %p86_p0 = scmp.ne.s32.totalorder %s17_s14, %s85_s18  ;;  %p90_p1 = scmp.lt.s32.totalorder %s17_s14, %s17_s14 }
   0x4   :  { %p91_p2 = scmp.lt.s32.totalorder %s85_s18, %s85_s18 }
   0x6   :  { %p92_p3 = por %p91_p2, %p90_p1 }
   0x8   :  { %p93_p4 = pnand %p92_p3, %p86_p0 }
   0xa   :  { %96 = shalt.err (!%p93_p4)
}
   0xb   :  { %s113_s19 = smov [#allocation2]   ;;  %s97_s20 = scalar_lea.vmem %s27_s17, 16 }
   0xc   :  { %19 = dma.vmem_to_smem %s17_s14, 16, %s113_s19, [#allocation3]  }
   0xd   :  { %p98_p5 = scmp.ne.s32.totalorder %s27_s17, %s97_s20  ;;  %p102_p6 = scmp.lt.s32.totalorder %s27_s17, %s27_s17 }
   0xe   :  { %p103_p7 = scmp.lt.s32.totalorder %s97_s20, %s97_s20 }
  0x10   :  { %p104_p8 = por %p103_p7, %p102_p6 }
  0x12   :  { %p105_p9 = pnand %p104_p8, %p98_p5 }
  0x14   :  { %108 = shalt.err (!%p105_p9)
}
  0x15   :  { %s114_s0 = smov [#allocation4]  }
  0x16   :  { %29 = dma.vmem_to_smem %s27_s17, 16, %s114_s0, [#allocation5]  }
  0x17   :  { %109 = dma.done.wait [#allocation3], 16  }
  0x18   :  { %110 = vsyncadd [#allocation3], 4294967280 }
  0x19   :  { %111 = dma.done.wait [#allocation5], 16  }
  0x1a   :  { %112 = vsyncadd [#allocation5], 4294967280 }
  0x1b   :  { %38 = sfence }
  0x1c   :  { %v39_v0 = vld [vmem:[%s151_s2] sm:$0xff]  ;;  %s115_s22 = smov 127   ;;  %s116_s23 = smov 1   ;;  %v40_v1 = vlaneseq }
  0x1d   :  { %59 = vrot.lane.b32.xlu0 %v39_v0, %s115_s22  ;;  %s44_s24 = sld [smem:[#allocation2]]  ;;  %s79_s25 = sld [smem:[#allocation2 + $0x3]] }
  0x1e   :  { %v41_v2 = vand.u32 127, %v40_v1  ;;  %s77_s26 = sld [smem:[#allocation2 + $0x1]]  ;;  %s78_s27 = sld [smem:[#allocation2 + $0x2]] }
  0x1f   :  { %s48_s28 = sld [smem:[#allocation4]]  ;;  %s80_s29 = sld [smem:[#allocation4 + $0x1]] }
  0x20   :  { %v42_v3 = vand.u32 1, %v41_v2 }
  0x21   :  { %61 = vrot.lane.b32.xlu0 %v39_v0, %s116_s23 }
  0x22   :  { %vm43_vm0 = vcmp.eq.s32.totalorder %v42_v3, 0 }
  0x23   :  { %v50_v4 = vstv %s44_s24  ;;  %v51_v5 = vstv %s79_s25 }
  0x24   :  { %v53_v7 = vstv %s77_s26  ;;  %v54_v8 = vstv %s78_s27  ;;  %v52_v9 = vsel %vm43_vm0, %v50_v4, %v51_v5 }
  0x25   :  { %v55_v10 = vsel %vm43_vm0, %v53_v7, %v54_v8  ;;  %v66_v11 = vmul.f32 %v52_v9, %v39_v0  ;;  %v56_v12 = vstv %s48_s28  ;;  %v57_v13 = vstv %s80_s29 }
  0x26   :  { %v58_v17 = vsel %vm43_vm0, %v56_v12, %v57_v13 }
  0x8f   :  { %v60_v6 = vpop.permute.xlu0 %59 }
  0x93   :  { %v62_v14 = vpop.permute.xlu0 %61 }
  0x94   :  { %v65_v15 = vsel %vm43_vm0, %v60_v6, %v62_v14 }
  0x95   :  { %v67_v16 = vmul.f32 %v65_v15, %v55_v10 }
  0x97   :  { %v68_v18 = vadd.f32 %v67_v16, %v66_v11 }
  0x99   :  { %v69_v19 = vadd.f32 %v68_v18, %v58_v17 }
  0x9b   :  { %70 = vst [vmem:[%s152_s3] sm:$0xff] %v69_v19 }
  0x9c   :  { %75 = vsyncpa [#allocation3], 1 }
  0x9d   :  { %76 = vsyncpa [#allocation5], 1 }

</bundles_post_ra>
